<compile_context>
chip_gen: v7x
topology: tpu7x:2x2x1
jax: 0.10.0
libtpu: 0.0.40
codegen_flags: <defaults>
</compile_context>

<pallas_src>
import functools

import jax
import jax.numpy as jnp
from jax import lax
from jax.experimental import pallas as pl
from jax.experimental.pallas import tpu as pltpu

_LANE = 128
_WIDTH_CANDIDATES = (1024, 512, 256)     # widest lane-dense slab that divides n
_TARGET_BLOCK_BYTES = 4 * 1024 * 1024    # ~4 MiB per buffer (in+out dbl-buf ~16 MiB)
_MIN_GRID_STEPS = 4                      # keep >=4 steps when the tensor is big enough


def _qcfs_kernel(scales_ref, x_ref, o_ref, *, t: int):
    # scales_ref (SMEM, scalar prefetch): [threshold, threshold / t]
    thr = scales_ref[0]
    out_scale = scales_ref[1]

    x = x_ref[...].astype(jnp.float32)        # native-dtype I/O, f32 math
    y = x / thr                                # keep reference op order (bit-exact)
    q = jnp.floor(y * float(t) + 0.5)
    q = jnp.clip(q, 0.0, float(t))             # == clamp(q/t, 0, 1) * t
    o_ref[...] = (q * out_scale).astype(o_ref.dtype)


def _qcfs_jnp(x, thr, out_scale, t: int):
    """Plain-jnp fallback (tiny tensors / <128-element tails), same op order."""
    y = x.astype(jnp.float32) / thr
    q = jnp.floor(y * float(t) + 0.5)
    q = jnp.clip(q, 0.0, float(t))
    return q * out_scale


def _choose_block_rows(rows: int, width: int, itemsize: int) -> int:
    """Byte-targeted, dtype-aware, min-grid-aware block row count."""
    granule = max(8, 32 // itemsize)          # 8 f32 / 16 bf16 / 32 int8 sublanes
    br = max(1, _TARGET_BLOCK_BYTES // (width * itemsize))
    if rows >= _MIN_GRID_STEPS * granule:     # big enough: keep >=4 grid steps
        br = min(br, pl.cdiv(rows, _MIN_GRID_STEPS))
    if br >= rows:
        return rows                            # single block == full dim (legal)
    br = max(granule, (br // granule) * granule)
    return min(br, rows)


def _qcfs_pallas_2d(flat, scales, t: int, out_dtype):
    """Run the kernel on a 1-D array whose length is a multiple of 128."""
    n = flat.shape[0]
    itemsize = jnp.dtype(out_dtype).itemsize

    width = _LANE
    for cand in _WIDTH_CANDIDATES:
        if n % cand == 0:
            width = cand
            break
    rows = n // width
    x2d = flat.reshape(rows, width)           # contiguous reshape: free

    block_rows = _choose_block_rows(rows, width, itemsize)
    grid = (pl.cdiv(rows, block_rows),)

    cost = pl.CostEstimate(
        flops=7 * n,
        transcendentals=0,
        bytes_accessed=2 * n * itemsize,
    )

    kernel = functools.partial(_qcfs_kernel, t=t)

    out2d = pl.pallas_call(
        kernel,
        out_shape=jax.ShapeDtypeStruct((rows, width), out_dtype),
        grid_spec=pltpu.PrefetchScalarGridSpec(
            num_scalar_prefetch=1,             # `scales` lands in SMEM
            grid=grid,
            in_specs=[
                pl.BlockSpec((block_rows, width), lambda i, s: (i, 0)),
            ],
            out_specs=pl.BlockSpec((block_rows, width), lambda i, s: (i, 0)),
        ),
        compiler_params=pltpu.CompilerParams(
            dimension_semantics=("parallel",),  # megacore / v7x 2-TC sharding
            vmem_limit_bytes=32 * 1024 * 1024,  # explicit: v5e default is only 16 MiB
        ),
        cost_estimate=cost,
    )(scales, x2d)

    return out2d.reshape(-1)


def qcfs_forward(x: jax.Array, up: jax.Array, t: int = 32) -> jax.Array:
    """Apply QCFS elementwise to x (any shape). `up` is a shape-(1,) parameter."""
    orig_shape = x.shape
    orig_dtype = x.dtype
    n = x.size

    # Hoist the threshold math out of the kernel (scalar).
    up_f = up.astype(jnp.float32).reshape(-1)[0]
    thr = (up_f + jnp.sqrt(up_f * up_f + 0.01)) * 0.5
    out_scale = thr / float(t)                 # exact when t is a power of two
    scales = jnp.stack([thr, out_scale])

    flat = x.reshape(-1)
    aligned = (n // _LANE) * _LANE

    if aligned == 0:
        # Tiny tensor (<128 elems): a kernel launch isn't worth it.
        out = _qcfs_jnp(flat, thr, out_scale, t).astype(orig_dtype)
        return out.reshape(orig_shape)

    head = flat if aligned == n else lax.slice(flat, (0,), (aligned,))
    out_head = _qcfs_pallas_2d(head, scales, t, orig_dtype)

    if aligned == n:
        return out_head.reshape(orig_shape)

    # Misaligned sizes: finish the <128-element tail in plain jnp instead of
    # paying full-tensor pad + slice HBM passes.
    tail = lax.slice(flat, (aligned,), (n,))
    out_tail = _qcfs_jnp(tail, thr, out_scale, t).astype(orig_dtype)
    return jnp.concatenate([out_head, out_tail]).reshape(orig_shape)


def qcfs_reference(x, up, t=32):
    """Pure-JAX reference mirroring the PyTorch forward."""
    thr = (up[0] + jnp.sqrt(up[0] ** 2 + 0.01)) / 2.0
    y = x / thr
    y = jnp.floor(y * t + 0.5)
    y = y / t
    y = jnp.clip(y, 0.0, 1.0)
    return y * thr


if __name__ == "__main__":
    key = jax.random.PRNGKey(0)
    # NCHW input, small shapes: batch=2, channels=4, spatial=16x16
    x = jax.random.normal(key, (2, 4, 16, 16), dtype=jnp.float32) * 4.0

    # nn.Parameter(torch.tensor([8.0]))
    up = jnp.array([8.0], dtype=jnp.float32)
    t = 32

    out = jax.block_until_ready(qcfs_forward(x, up, t=t))
    ref = qcfs_reference(x, up, t=t)
    assert out.shape == x.shape and out.dtype == x.dtype
    assert jnp.allclose(out, ref, atol=1e-5, rtol=1e-5), "mismatch vs reference"

    # Also exercise the 128-misaligned path (Pallas prefix + jnp tail, no pad).
    x2 = jax.random.normal(jax.random.PRNGKey(1), (2, 4, 17, 17), dtype=jnp.float32) * 4.0
    out2 = jax.block_until_ready(qcfs_forward(x2, up, t=t))
    ref2 = qcfs_reference(x2, up, t=t)
    assert out2.shape == x2.shape and out2.dtype == x2.dtype
    assert jnp.allclose(out2, ref2, atol=1e-5, rtol=1e-5), "mismatch (misaligned path)"

    print("KERNEL_OK")
</pallas_src>

<mosaic_0001>
module attributes {stable_mosaic.version = 11 : i64} {
  func.func @_qcfs_kernel(%arg0: i32, %arg1: memref<2xf32, #tpu.memory_space<smem>>, %arg2: memref<2x1024xf32, #tpu.memory_space<vmem>>, %arg3: memref<2x1024xf32, #tpu.memory_space<vmem>>) attributes {dimension_semantics = [#tpu.dimension_semantics<parallel>], iteration_bounds = array<i64: 1>, scalar_prefetch = 1 : i64, scratch_operands = 0 : i64, tpu.core_type = #tpu.core_type<tc>, window_params = [{transform_indices = @transform_0, window_bounds = array<i64: 2, 1024>}, {transform_indices = @transform_1, window_bounds = array<i64: 2, 1024>}]} {
    %c0 = arith.constant 0 : index
    %0 = memref.load %arg1[%c0] : memref<2xf32, #tpu.memory_space<smem>>
    %c1 = arith.constant 1 : index
    %1 = memref.load %arg1[%c1] : memref<2xf32, #tpu.memory_space<smem>>
    %c0_0 = arith.constant 0 : index
    %c0_1 = arith.constant 0 : index
    %2 = vector.load %arg2[%c0_0, %c0_1] : memref<2x1024xf32, #tpu.memory_space<vmem>>, vector<2x1024xf32>
    %3 = vector.broadcast %0 : f32 to vector<2x1024xf32>
    %4 = arith.divf %2, %3 : vector<2x1024xf32>
    %cst = arith.constant 3.200000e+01 : f32
    %5 = vector.broadcast %cst : f32 to vector<2x1024xf32>
    %6 = arith.mulf %4, %5 : vector<2x1024xf32>
    %cst_2 = arith.constant 5.000000e-01 : f32
    %7 = vector.broadcast %cst_2 : f32 to vector<2x1024xf32>
    %8 = arith.addf %6, %7 : vector<2x1024xf32>
    %9 = math.floor %8 : vector<2x1024xf32>
    %cst_3 = arith.constant 0.000000e+00 : f32
    %cst_4 = arith.constant 3.200000e+01 : f32
    %10 = vector.broadcast %cst_3 : f32 to vector<2x1024xf32>
    %11 = arith.maximumf %10, %9 : vector<2x1024xf32>
    %12 = vector.broadcast %cst_4 : f32 to vector<2x1024xf32>
    %13 = arith.minimumf %12, %11 : vector<2x1024xf32>
    %14 = vector.broadcast %1 : f32 to vector<2x1024xf32>
    %15 = arith.mulf %13, %14 : vector<2x1024xf32>
    %c0_5 = arith.constant 0 : index
    %c0_6 = arith.constant 0 : index
    %16 = vector.load %arg3[%c0_5, %c0_6] : memref<2x1024xf32, #tpu.memory_space<vmem>>, vector<2x1024xf32>
    tpu.vector_store %arg3[%c0_5, %c0_6], %15 {strides = array<i32>} : memref<2x1024xf32, #tpu.memory_space<vmem>>, vector<2x1024xf32>,
    return
  }
  func.func @transform_0(%arg0: i32, %arg1: memref<2xf32, #tpu.memory_space<smem>>) -> (i32, i32) {
    %c0_i32 = arith.constant 0 : i32
    %c0_i32_0 = arith.constant 0 : i32
    return %arg0, %c0_i32 : i32, i32
  }
  func.func @transform_1(%arg0: i32, %arg1: memref<2xf32, #tpu.memory_space<smem>>) -> (i32, i32) {
    %c0_i32 = arith.constant 0 : i32
    %c0_i32_0 = arith.constant 0 : i32
    return %arg0, %c0_i32 : i32, i32
  }
}

</mosaic_0001>

<bundles_post_ra>
// kernel: tpu_custom_call.1
= control target key start
LH: loop header
LB: loop body
LE: loop exit
PB: predicated region body
PF: predicated region fallthrough
CT: control target
= control target key end

     0   :  { %s184_s0 = inlined_call_operand.hbm [shape: f32[2], index: 0, kind: input, shape index: {}]   ;;  %s185_s1 = inlined_call_operand.hbm [shape: f32[2,1024], index: 1, kind: input, shape index: {}]   ;;  %s186_s2 = inlined_call_operand.hbm [shape: f32[2,1024], index: 2, kind: output, shape index: {}]  }
   0x1   :  { %s70_s11 = scalar_lea.hbm %s184_s0, 16 }
   0x2   :  { %p71_p0 = scmp.ne.s32.totalorder %s184_s0, %s70_s11  ;;  %p74_p1 = scmp.lt.u32.totalorder %s70_s11, %s184_s0 }
   0x4   :  { %p76_p2 = pnand %p74_p1, %p71_p0 }
   0x6   :  { %79 = shalt.err (!%p76_p2)  }
   0x7   :  { %s130_s16 = smov [#allocation3]  }
   0x8   :  { %8 = dma.hbm_to_smem %s184_s0, 16, %s130_s16, [#allocation2] }
   0x9   :  { %124 = dma.done.wait [#allocation2], 16 }
   0xa   :  { %125 = vsyncadd [#allocation2], 4294967280 }
   0xb   :  { %10 = sfence }
   0xc   :  { %11 = vsyncpa [#allocation5], 0 }
   0xd   :  { %12 = vsyncpa [#allocation6], 0  ;;  %s131_s19 = smov [#allocation4]   ;;  %s80_s23 = scalar_lea.hbm %s185_s1, 256 }
   0xe   :  { %s19_s20 = sshll.u32 %s131_s19, 4  ;;  %p81_p3 = scmp.ne.s32.totalorder %s185_s1, %s80_s23  ;;  %s20_s20 = int_to_ptr.vmem [resolvable:$true] %s19_s20 }
   0xf   :  { %p84_p4 = scmp.lt.u32.totalorder %s80_s23, %s185_s1 }
  0x11   :  { %p86_p5 = pnand %p84_p4, %p81_p3 }
  0x13   :  { %89 = shalt.err (!%p86_p5)
}
  0x14   :  { %s90_s0 = scalar_lea.vmem %s20_s20, 256  ;;  %p95_p7 = scmp.lt.s32.totalorder %s20_s20, %s20_s20 }
  0x15   :  { %p91_p6 = scmp.ne.s32.totalorder %s20_s20, %s90_s0  ;;  %p96_p8 = scmp.lt.s32.totalorder %s90_s0, %s90_s0 }
  0x17   :  { %p97_p9 = por %p96_p8, %p95_p7 }
  0x19   :  { %p98_p10 = pnand %p97_p9, %p91_p6 }
  0x1b   :  { %101 = shalt.err (!%p98_p10)
}
  0x1c   :  { %22 = dma.hbm_to_vmem [thread:$0]  %s185_s1, 256, %s20_s20, [#allocation5]  }
  0x1d   :  { %126 = dma.done.wait [#allocation5], 256  }
  0x1e   :  { %127 = vsyncadd [#allocation5], 4294967040  ;;  %s26_s30 = sld [smem:[#allocation3]]  ;;  %v28_v1 = vld [vmem:[#allocation4] sm:$0xff]  ;;  %v29_v2 = vld [vmem:[#allocation4 + $0x8] sm:$0xff]  ;;  %s64_s3 = sld [smem:[#allocation3 + $0x1]] }
  0x1f   :  { %s132_s1 = smov [#allocation7]  }
  0x20   :  { %s55_s4 = sshll.u32 %s132_s1, 4  ;;  %s56_s4 = int_to_ptr.vmem [resolvable:$true] %s55_s4 }
  0x21   :  { %s102_s5 = scalar_lea.vmem %s56_s4, 256  ;;  %p107_p12 = scmp.lt.s32.totalorder %s56_s4, %s56_s4 }
  0x22   :  { %p103_p11 = scmp.ne.s32.totalorder %s56_s4, %s102_s5  ;;  %p108_p13 = scmp.lt.s32.totalorder %s102_s5, %s102_s5 }
  0x24   :  { %v30_v0 = vstv %s26_s30  ;;  %v44_v14 = vstv %s64_s3  ;;  %p109_p0 = por %p108_p13, %p107_p12 }
  0x25   :  { %68 = vrcp.f32 %v30_v0 }
  0x26   :  { %p110_p1 = pnand %p109_p0, %p103_p11 }
  0x2f   :  { %v69_v3 = vpop.eup %68 }
  0x30   :  { %v32_v4 = vmul.f32 %v69_v3, %v28_v1  ;;  %v33_v5 = vmul.f32 %v69_v3, %v29_v2 }
  0x32   :  { %v34_v6 = vmul.f32 32.0, %v32_v4  ;;  %v35_v7 = vmul.f32 32.0, %v33_v5 }
  0x34   :  { %v36_v8 = vadd.f32 0.5, %v34_v6  ;;  %v37_v9 = vadd.f32 0.5, %v35_v7 }
  0x36   :  { %v38_v10 = vfloor.f32 %v36_v8  ;;  %v39_v11 = vfloor.f32 %v37_v9 }
  0x38   :  { %v40_v12 = vmax.f32 %v38_v10, 0.0  ;;  %v41_v13 = vmax.f32 %v39_v11, 0.0 }
  0x3a   :  { %v42_v15 = vmin.f32 %v40_v12, 32.0  ;;  %v43_v16 = vmin.f32 %v41_v13, 32.0 }
  0x3c   :  { %v45_v17 = vmul.f32 %v44_v14, %v42_v15  ;;  %v46_v18 = vmul.f32 %v44_v14, %v43_v16 }
  0x3e   :  { %47 = vst [vmem:[#allocation7] sm:$0xff] %v45_v17  ;;  %48 = vst [vmem:[#allocation7 + $0x8] sm:$0xff] %v46_v18 }
  0x3f   :  { %113 = shalt.err (!%p110_p1)
}
  0x40   :  { %s114_s8 = scalar_lea.hbm %s186_s2, 256 }
  0x41   :  { %p115_p2 = scmp.ne.s32.totalorder %s186_s2, %s114_s8  ;;  %p118_p3 = scmp.lt.u32.totalorder %s114_s8, %s186_s2 }
  0x43   :  { %p120_p4 = pnand %p118_p3, %p115_p2 }
  0x45   :  { %123 = shalt.err (!%p120_p4)
}
  0x46   :  { %58 = dma.vmem_to_hbm [thread:$0]  %s56_s4, 256, %s186_s2, [#allocation6]  }
  0x47   :  { %128 = dma.done.wait [#allocation6], 256  }
  0x48   :  { %129 = vsyncadd [#allocation6], 4294967040 }
  0x49   :  { %62 = vsyncpa [#allocation5], 1 }
  0x4a   :  { %63 = vsyncpa [#allocation6], 1 }

</bundles_post_ra>
